<compile_context>
chip_gen: v7x
topology: tpu7x:2x2x1
jax: 0.10.0
libtpu: 0.0.40
codegen_flags: <defaults>
</compile_context>

<pallas_src>
import math

import jax
import jax.numpy as jnp
from jax.experimental import pallas as pl
from jax.experimental.pallas import tpu as pltpu


def _make_ffn_kernel(batch, in_f, hidden, out_f, row_x, row_w1, row_b1,
                     row_w2, row_b2):
    """Builds the whole-forward-pass kernel over one packed (8,128) VMEM slab."""

    def kernel(p_ref, out_ref):
        # Static sub-tile slices of the single packed operand (compile-time
        # offsets inside one (8,128) tile).
        x = p_ref[row_x:row_x + batch, 0:in_f]          # (batch, in_f)
        w1 = p_ref[row_w1:row_w1 + in_f, 0:hidden]      # (in_f, hidden)
        b1 = p_ref[row_b1:row_b1 + 1, 0:hidden]         # (1, hidden)
        w2 = p_ref[row_w2:row_w2 + hidden, 0:out_f]     # (hidden, out_f)
        b2 = p_ref[row_b2:row_b2 + 1, 0:out_f]          # (1, out_f)

        # ---- Layer 1: x @ W1 + b1, sigmoid ---------------------------------
        # K == in_f == 2 contraction expanded as VPU broadcast FMAs (skip the
        # MXU entirely). The bias is the affine constant term.
        a1 = b1
        for k in range(in_f):
            a1 = a1 + x[:, k:k + 1] * w1[k:k + 1, :]
        # Exact sigmoid via a single EUP tanh: sigmoid(a) = 0.5*tanh(a/2)+0.5
        h1 = 0.5 * jnp.tanh(0.5 * a1) + 0.5

        # ---- Layer 2: H1 @ W2 + b2, softmax (literal exp / sum, as PyTorch) -
        a2 = b2
        for k in range(hidden):
            a2 = a2 + h1[:, k:k + 1] * w2[k:k + 1, :]
        e = jnp.exp(a2)
        out_ref[...] = e / jnp.sum(e, axis=-1, keepdims=True)

    return kernel


def feed_forward_net(x, w1, b1, w2, b2):
    """Wrapper: packs all operands into one (8,128) f32 tile -> one input DMA."""
    x = x.astype(jnp.float32)
    w1 = w1.astype(jnp.float32)
    b1 = b1.astype(jnp.float32)
    w2 = w2.astype(jnp.float32)
    b2 = b2.astype(jnp.float32)

    batch, in_f = x.shape
    hidden = w1.shape[-1]
    out_f = w2.shape[-1]

    # Row layout inside the single (8, 128) slab.
    row_x = 0                       # rows [0, batch)
    row_w1 = row_x + batch          # rows [2, 2+in_f)
    row_b1 = row_w1 + in_f          # row 4
    row_w2 = row_b1 + 1             # rows [5, 5+hidden)
    row_b2 = row_w2 + hidden        # row 7
    assert row_b2 + 1 <= 8, "packed layout must fit one (8,128) tile"

    packed = jnp.zeros((8, 128), dtype=jnp.float32)
    packed = packed.at[row_x:row_x + batch, 0:in_f].set(x)
    packed = packed.at[row_w1:row_w1 + in_f, 0:hidden].set(w1)
    packed = packed.at[row_b1, 0:hidden].set(b1)
    packed = packed.at[row_w2:row_w2 + hidden, 0:out_f].set(w2)
    packed = packed.at[row_b2, 0:out_f].set(b2)

    kernel = _make_ffn_kernel(batch, in_f, hidden, out_f,
                              row_x, row_w1, row_b1, row_w2, row_b2)

    vmem_spec = pl.BlockSpec(memory_space=pltpu.MemorySpace.VMEM)
    return pl.pallas_call(
        kernel,
        out_shape=jax.ShapeDtypeStruct((batch, out_f), jnp.float32),
        in_specs=[vmem_spec],
        out_specs=vmem_spec,
    )(packed)


def reference_forward(x, w1, b1, w2, b2):
    """Pure-JAX reference matching the PyTorch forward exactly."""
    a1 = jnp.matmul(x, w1) + b1
    h1 = jax.nn.sigmoid(a1)
    a2 = jnp.matmul(h1, w2) + b2
    e = jnp.exp(a2)
    return e / jnp.sum(e, axis=-1, keepdims=True)


if __name__ == "__main__":
    key = jax.random.PRNGKey(0)
    k_x, k_w1, k_w2 = jax.random.split(key, 3)

    # The module's shape constraints force batch == features == 2 (see header).
    n_samples, n_features = 2, 2
    hidden, n_classes = 2, 4

    # Deterministic synthetic parameters (mirrors torch.randn(...)/sqrt(fan)).
    x = jax.random.normal(k_x, (n_samples, n_features), dtype=jnp.float32)
    w1 = jax.random.normal(k_w1, (n_samples, n_features), dtype=jnp.float32) / math.sqrt(n_features)
    b1 = jnp.zeros((n_features,), dtype=jnp.float32)
    w2 = jax.random.normal(k_w2, (hidden, n_classes), dtype=jnp.float32) / math.sqrt(hidden)
    b2 = jnp.zeros((n_classes,), dtype=jnp.float32)

    out = feed_forward_net(x, w1, b1, w2, b2)
    out = jax.block_until_ready(out)

    ref = reference_forward(x, w1, b1, w2, b2)
    assert out.shape == (n_samples, n_classes)
    # Exact sigmoid / exact divide -> tight tolerance.
    assert jnp.allclose(out, ref, atol=1e-5, rtol=1e-5), (out, ref)
    # Softmax rows must sum to ~1.
    assert jnp.allclose(jnp.sum(out, axis=-1), jnp.ones((n_samples,)), atol=1e-5)

    print("KERNEL_OK")
</pallas_src>

<mosaic_0001>
module attributes {stable_mosaic.version = 11 : i64} {
  func.func @kernel(%arg0: memref<8x128xf32, #tpu.memory_space<vmem>>, %arg1: memref<2x4xf32, #tpu.memory_space<vmem>>) attributes {dimension_semantics = [], scalar_prefetch = 0 : i64, scratch_operands = 0 : i64, tpu.core_type = #tpu.core_type<tc>} {
    %c0 = arith.constant 0 : index
    %c0_0 = arith.constant 0 : index
    %0 = vector.load %arg0[%c0, %c0_0] : memref<8x128xf32, #tpu.memory_space<vmem>>, vector<2x2xf32>
    %c2 = arith.constant 2 : index
    %c0_1 = arith.constant 0 : index
    %1 = vector.load %arg0[%c2, %c0_1] : memref<8x128xf32, #tpu.memory_space<vmem>>, vector<2x2xf32>
    %c4 = arith.constant 4 : index
    %c0_2 = arith.constant 0 : index
    %2 = vector.load %arg0[%c4, %c0_2] : memref<8x128xf32, #tpu.memory_space<vmem>>, vector<1x2xf32>
    %c5 = arith.constant 5 : index
    %c0_3 = arith.constant 0 : index
    %3 = vector.load %arg0[%c5, %c0_3] : memref<8x128xf32, #tpu.memory_space<vmem>>, vector<2x4xf32>
    %c7 = arith.constant 7 : index
    %c0_4 = arith.constant 0 : index
    %4 = vector.load %arg0[%c7, %c0_4] : memref<8x128xf32, #tpu.memory_space<vmem>>, vector<1x4xf32>
    %5 = vector.extract_strided_slice %0 {offsets = [0, 0], sizes = [2, 1], strides = [1, 1]} : vector<2x2xf32> to vector<2x1xf32>
    %6 = vector.extract_strided_slice %1 {offsets = [0, 0], sizes = [1, 2], strides = [1, 1]} : vector<2x2xf32> to vector<1x2xf32>
    %7 = vector.broadcast %5 : vector<2x1xf32> to vector<2x2xf32>
    %8 = vector.broadcast %6 : vector<1x2xf32> to vector<2x2xf32>
    %9 = arith.mulf %7, %8 : vector<2x2xf32>
    %10 = vector.broadcast %2 : vector<1x2xf32> to vector<2x2xf32>
    %11 = arith.addf %10, %9 : vector<2x2xf32>
    %12 = vector.extract_strided_slice %0 {offsets = [0, 1], sizes = [2, 1], strides = [1, 1]} : vector<2x2xf32> to vector<2x1xf32>
    %13 = vector.extract_strided_slice %1 {offsets = [1, 0], sizes = [1, 2], strides = [1, 1]} : vector<2x2xf32> to vector<1x2xf32>
    %14 = vector.broadcast %12 : vector<2x1xf32> to vector<2x2xf32>
    %15 = vector.broadcast %13 : vector<1x2xf32> to vector<2x2xf32>
    %16 = arith.mulf %14, %15 : vector<2x2xf32>
    %17 = arith.addf %11, %16 : vector<2x2xf32>
    %cst = arith.constant 5.000000e-01 : f32
    %18 = vector.broadcast %cst : f32 to vector<2x2xf32>
    %19 = arith.mulf %18, %17 : vector<2x2xf32>
    %20 = math.tanh %19 : vector<2x2xf32>
    %cst_5 = arith.constant 5.000000e-01 : f32
    %21 = vector.broadcast %cst_5 : f32 to vector<2x2xf32>
    %22 = arith.mulf %21, %20 : vector<2x2xf32>
    %cst_6 = arith.constant 5.000000e-01 : f32
    %23 = vector.broadcast %cst_6 : f32 to vector<2x2xf32>
    %24 = arith.addf %22, %23 : vector<2x2xf32>
    %25 = vector.extract_strided_slice %24 {offsets = [0, 0], sizes = [2, 1], strides = [1, 1]} : vector<2x2xf32> to vector<2x1xf32>
    %26 = vector.extract_strided_slice %3 {offsets = [0, 0], sizes = [1, 4], strides = [1, 1]} : vector<2x4xf32> to vector<1x4xf32>
    %27 = vector.broadcast %25 : vector<2x1xf32> to vector<2x4xf32>
    %28 = vector.broadcast %26 : vector<1x4xf32> to vector<2x4xf32>
    %29 = arith.mulf %27, %28 : vector<2x4xf32>
    %30 = vector.broadcast %4 : vector<1x4xf32> to vector<2x4xf32>
    %31 = arith.addf %30, %29 : vector<2x4xf32>
    %32 = vector.extract_strided_slice %24 {offsets = [0, 1], sizes = [2, 1], strides = [1, 1]} : vector<2x2xf32> to vector<2x1xf32>
    %33 = vector.extract_strided_slice %3 {offsets = [1, 0], sizes = [1, 4], strides = [1, 1]} : vector<2x4xf32> to vector<1x4xf32>
    %34 = vector.broadcast %32 : vector<2x1xf32> to vector<2x4xf32>
    %35 = vector.broadcast %33 : vector<1x4xf32> to vector<2x4xf32>
    %36 = arith.mulf %34, %35 : vector<2x4xf32>
    %37 = arith.addf %31, %36 : vector<2x4xf32>
    %38 = math.exp %37 : vector<2x4xf32>
    %cst_7 = arith.constant dense<0.000000e+00> : vector<2xf32>
    %39 = vector.multi_reduction <add>, %38, %cst_7 [1] : vector<2x4xf32> to vector<2xf32>
    %40 = vector.shape_cast %39 : vector<2xf32> to vector<2x1xf32>
    %41 = vector.broadcast %40 : vector<2x1xf32> to vector<2x4xf32>
    %42 = arith.divf %38, %41 : vector<2x4xf32>
    %c0_8 = arith.constant 0 : index
    %c0_9 = arith.constant 0 : index
    %43 = vector.load %arg1[%c0_8, %c0_9] : memref<2x4xf32, #tpu.memory_space<vmem>>, vector<2x4xf32>
    tpu.vector_store %arg1[%c0_8, %c0_9], %42 {strides = array<i32>} : memref<2x4xf32, #tpu.memory_space<vmem>>, vector<2x4xf32>,
    return
  }
}

</mosaic_0001>

<bundles_post_ra>
// kernel: tpu_custom_call.1
= control target key start
LH: loop header
LB: loop body
LE: loop exit
PB: predicated region body
PF: predicated region fallthrough
CT: control target
= control target key end

     0   :  { %6 = vsyncpa [#allocation3], 0  ;;  %s206_s0 = inlined_call_operand.hbm [shape: f32[8,128], index: 0, kind: input, shape index: {}]   ;;  %s207_s1 = inlined_call_operand.hbm [shape: f32[2,4], index: 1, kind: output, shape index: {}]  }
   0x1   :  { %7 = vsyncpa [#allocation4], 0  ;;  %s168_s6 = smov [#allocation2]   ;;  %s120_s10 = scalar_lea.hbm %s206_s0, 128 }
   0x2   :  { %s14_s7 = sshll.u32 %s168_s6, 4  ;;  %p121_p0 = scmp.ne.s32.totalorder %s206_s0, %s120_s10  ;;  %s15_s7 = int_to_ptr.vmem [resolvable:$true] %s14_s7 }
   0x3   :  { %p124_p1 = scmp.lt.u32.totalorder %s120_s10, %s206_s0 }
   0x5   :  { %p126_p2 = pnand %p124_p1, %p121_p0 }
   0x7   :  { %129 = shalt.err (!%p126_p2)
}
   0x8   :  { %s130_s15 = scalar_lea.vmem %s15_s7, 128  ;;  %p135_p4 = scmp.lt.s32.totalorder %s15_s7, %s15_s7 }
   0x9   :  { %p131_p3 = scmp.ne.s32.totalorder %s15_s7, %s130_s15  ;;  %p136_p5 = scmp.lt.s32.totalorder %s130_s15, %s130_s15 }
   0xb   :  { %p137_p6 = por %p136_p5, %p135_p4 }
   0xd   :  { %p138_p7 = pnand %p137_p6, %p131_p3 }
   0xf   :  { %141 = shalt.err (!%p138_p7)
}
  0x10   :  { %17 = dma.hbm_to_vmem [thread:$0]  %s206_s0, 128, %s15_s7, [#allocation3]  }
  0x11   :  { %164 = dma.done.wait [#allocation3], 128  }
  0x12   :  { %165 = vsyncadd [#allocation3], 4294967168  ;;  %v169_v0 = vmov 0   ;;  %v21_v1 = vld [vmem:[#allocation2] sm:$0x3]  ;;  %v170_v2 = vmov 1   ;;  %v31_v3 = vlaneseq }
  0x13   :  { %110 = vset.pattern.permute.xlu0 %v169_v0  ;;  %112 = vset.pattern.permute.xlu1 %v169_v0  ;;  %v22_v6 = vld [vmem:[#allocation2 + $0x2] sm:$0x3]  ;;  %v104_v12 = vld [vmem:[#allocation2 + $0x4] ss:$0 sm:$0xff]  ;;  %v24_v21 = vld [vmem:[#allocation2 + $0x5] sm:$0x3] }
  0x14   :  { %28 = vperm.xlu0 %110, %v21_v1   ;;  %v32_v4 = vshrl.u32 %v31_v3, 7  ;;  %v105_v26 = vld [vmem:[#allocation2 + $0x7] ss:$0 sm:$0xff]  ;;  %vm82_vm0 = vcmask 25600   ;;  %s171_s0 = smov [#allocation5]  }
  0x15   :  { %s95_s18 = sshll.u32 %s171_s0, 4  ;;  %s96_s18 = int_to_ptr.vmem [resolvable:$true] %s95_s18 }
  0x16   :  { %v33_v5 = vsub.s32 0, %v32_v4  ;;  %v47_v8 = vsub.s32 1, %v32_v4  ;;  %s142_s19 = scalar_lea.vmem %s96_s18, 32  ;;  %p147_p9 = scmp.lt.s32.totalorder %s96_s18, %s96_s18 }
  0x17   :  { %p143_p8 = scmp.ne.s32.totalorder %s96_s18, %s142_s19  ;;  %p148_p10 = scmp.lt.s32.totalorder %s142_s19, %s142_s19 }
  0x18   :  { %111 = vset.pattern.permute.xlu0 %v170_v2  ;;  %v34_v7 = vrot.slane %v22_v6, %v33_v5  ;;  %v48_v11 = vrot.slane %v22_v6, %v47_v8  ;;  %v63_v22 = vrot.slane %v24_v21, %v33_v5  ;;  %v77_v25 = vrot.slane %v24_v21, %v47_v8 }
  0x19   :  { %42 = vperm.xlu0 %111, %v21_v1   ;;  %p149_p11 = por %p148_p10, %p147_p9 }
  0x1b   :  { %p150_p12 = pnand %p149_p11, %p143_p8 }
  0x93   :  { %v29_v9 = vpop.permute.xlu0 %28 }
  0x94   :  { %v35_v10 = vmul.f32 %v34_v7, %v29_v9 }
  0x96   :  { %v40_v14 = vadd.f32 %v104_v12, %v35_v10 }
  0x98   :  { %v43_v13 = vpop.permute.xlu0 %42 }
  0x99   :  { %v49_v15 = vmul.f32 %v48_v11, %v43_v13 }
  0x9b   :  { %v50_v16 = vadd.f32 %v49_v15, %v40_v14 }
  0x9d   :  { %v51_v17 = vmul.f32 0.5, %v50_v16 }
  0x9f   :  { %114 = vtanh.f32 %v51_v17 }
  0xa9   :  { %v115_v18 = vpop.eup %114 }
  0xaa   :  { %v53_v19 = vmul.f32 0.5, %v115_v18 }
  0xac   :  { %v54_v20 = vadd.f32 0.5, %v53_v19 }
  0xae   :  { %57 = vperm.xlu1 %112, %v54_v20  }
  0xb2   :  { %113 = vset.pattern.permute.xlu1 %v170_v2 }
  0xb3   :  { %71 = vperm.xlu1 %113, %v54_v20  }
 0x12d   :  { %v58_v23 = vpop.permute.xlu1 %57 }
 0x12e   :  { %v64_v24 = vmul.f32 %v63_v22, %v58_v23 }
 0x130   :  { %v69_v28 = vadd.f32 %v105_v26, %v64_v24 }
 0x132   :  { %v72_v27 = vpop.permute.xlu1 %71 }
 0x133   :  { %v78_v29 = vmul.f32 %v77_v25, %v72_v27 }
 0x135   :  { %v79_v30 = vadd.f32 %v78_v29, %v69_v28 }
 0x137   :  { %v80_v31 = vmul.f32 1.442695, %v79_v30 }
 0x139   :  { %116 = vpow2.f32 %v80_v31 }
 0x143   :  { %v117_v32 = vpop.eup %116 }
 0x144   :  { %v83_v33 = vsel %vm82_vm0, %v117_v32, 0.0 }
 0x145   :  { %84 = vadd.xlane.f32.xlu1 %v83_v33 }
 0x1d2   :  { %v85_v34 = vpop.xlane.xlu1 %84 }
 0x1d3   :  { %118 = vrcp.f32 %v85_v34 }
 0x1dd   :  { %v119_v35 = vpop.eup %118 }
 0x1de   :  { %v87_v36 = vmul.f32 %v119_v35, %v117_v32 }
 0x1e0   :  { %88 = vst.msk [vmem:[#allocation5] sm:$0x3] %vm82_vm0, %v87_v36 }
 0x1e1   :  { %153 = shalt.err (!%p150_p12)
}
 0x1e2   :  { %s154_s22 = scalar_lea.hbm %s207_s1, 32 }
 0x1e3   :  { %p155_p13 = scmp.ne.s32.totalorder %s207_s1, %s154_s22  ;;  %p158_p0 = scmp.lt.u32.totalorder %s154_s22, %s207_s1 }
 0x1e5   :  { %p160_p1 = pnand %p158_p0, %p155_p13 }
 0x1e7   :  { %163 = shalt.err (!%p160_p1)
}
 0x1e8   :  { %98 = dma.vmem_to_hbm [thread:$0]  %s96_s18, 32, %s207_s1, [#allocation4]  }
 0x1e9   :  { %166 = dma.done.wait [#allocation4], 32  }
 0x1ea   :  { %167 = vsyncadd [#allocation4], 4294967264 }
 0x1eb   :  { %102 = vsyncpa [#allocation3], 1 }
 0x1ec   :  { %103 = vsyncpa [#allocation4], 1 }

</bundles_post_ra>
